<compile_context>
chip_gen: v5e
topology: v5e:2x2
jax: 0.10.0
libtpu: 0.0.40
codegen_flags: <defaults>
</compile_context>

<pallas_src>
import functools

import jax
import jax.numpy as jnp
from jax.experimental import pallas as pl
from jax.experimental.pallas import tpu as pltpu


def _focal_ce_kernel(logits_ref, target_ref, partial_ref, *,
                     gamma, alpha, clamp, n_rows, tile_rows):
    i = pl.program_id(0)

    x = logits_ref[...].astype(jnp.float32)            # (TN, C)
    if clamp:  # eval-mode path: torch.clamp(logits, -5, 5)
        x = jnp.clip(x, -5.0, 5.0)
    tgt = target_ref[...]                              # (TN, 1) int32
    tn, c = x.shape

    # Fused one-hot "gather" of the target logit via masked max over lanes
    # (avoids materializing a separate f32 one-hot and an extra multiply).
    col = jax.lax.broadcasted_iota(jnp.int32, (tn, c), 1)
    tgt_logit = jnp.max(jnp.where(col == tgt, x, -jnp.inf),
                        axis=-1, keepdims=True)                         # (TN, 1)

    # Numerically stable log-sum-exp cross entropy, per row.
    m = jnp.max(x, axis=-1, keepdims=True)                              # (TN, 1)
    lse = jnp.log(jnp.sum(jnp.exp(x - m), axis=-1, keepdims=True)) + m  # (TN, 1)
    ce = jnp.maximum(lse - tgt_logit, 0.0)   # clamp -eps rounding -> no NaN in pow

    # 1 - pt = 1 - exp(-ce), clamped >= 0 so the fractional power stays real.
    one_minus_pt = jnp.maximum(1.0 - jnp.exp(-ce), 0.0)
    focal = alpha * jnp.power(one_minus_pt, gamma) * ce                 # (TN, 1)

    # Mask rows past N (ragged / padded last tile).  True select, so inf/NaN
    # produced by garbage-padded rows never reaches the sum.
    row = jax.lax.broadcasted_iota(jnp.int32, (tn, 1), 0) + i * tile_rows
    focal = jnp.where(row < n_rows, focal, 0.0)

    # One f32 partial sum per grid step -> this step's own output block.
    partial_ref[...] = jnp.broadcast_to(jnp.sum(focal), (1, 8, 128))


def per_class_bce_focal_loss(logits, target, *, gamma=0.2, alpha=0.6,
                             training=True, block_rows=None):
    """logits: (N, C) float (any float dtype); target: reshapeable to (N,) ints."""
    n, c = logits.shape
    tgt = target.reshape(-1).astype(jnp.int32).reshape(n, 1)

    # --- Tile sizing: dtype-aware, ~10 MiB of streamed bytes per grid step
    #     (logits block in its native dtype + the lane-padded int32 target
    #     column), rows a multiple of 8 sublanes, no artificial row cap. ---
    c_pad = ((c + 127) // 128) * 128
    row_bytes = c_pad * logits.dtype.itemsize + 128 * 4
    if block_rows is None:
        budget = 10 * 1024 * 1024
        tn = max(8, (budget // row_bytes) // 8 * 8)
    else:
        tn = max(8, (int(block_rows) // 8) * 8)
    if n <= tn:
        tn = n  # single tile: block == full dim, no sublane-divisibility needed
    grid_n = pl.cdiv(n, tn)

    # --- VMEM limit: actual double-buffered footprint, capped at 75% of the
    #     device's physical VMEM (keeps big tiles legal on v5e/v6e while never
    #     overshooting v7x's 64 MiB). ---
    vmem_need = 2 * tn * row_bytes + 2 * 8 * 128 * 4
    try:
        vmem_phys = pltpu.get_tpu_info().vmem_capacity_bytes
    except Exception:  # conservative fallback: v7x has 64 MiB per TensorCore
        vmem_phys = 64 * 1024 * 1024
    vmem_limit = int(min(max(32 * 1024 * 1024, int(vmem_need * 1.25)),
                         (vmem_phys * 3) // 4))

    kernel = functools.partial(
        _focal_ce_kernel, gamma=float(gamma), alpha=float(alpha),
        clamp=not training, n_rows=n, tile_rows=tn)

    partials = pl.pallas_call(
        kernel,
        out_shape=jax.ShapeDtypeStruct((grid_n, 8, 128), jnp.float32),
        grid_spec=pltpu.PrefetchScalarGridSpec(
            num_scalar_prefetch=0,
            grid=(grid_n,),
            in_specs=[
                pl.BlockSpec((tn, c), lambda i: (i, 0)),   # logits tile (VMEM)
                pl.BlockSpec((tn, 1), lambda i: (i, 0)),   # target tile (VMEM)
            ],
            # Each grid step owns its own (1, 8, 128) partial-sum block, so the
            # grid axis carries no state and can be sharded across TensorCores.
            out_specs=pl.BlockSpec((1, 8, 128), lambda i: (i, 0, 0)),
        ),
        compiler_params=pltpu.CompilerParams(
            dimension_semantics=("parallel",),
            vmem_limit_bytes=vmem_limit,
        ),
    )(logits, tgt)   # NOTE: no host-side f32 cast — bf16 inputs stay bf16 in HBM

    # reduction='mean': tree-sum the per-block partials, multiply by 1/N.
    return jnp.sum(partials[:, 0, 0]) * jnp.float32(1.0 / n)


def _reference(logits, target, gamma=0.2, alpha=0.6, training=True):
    x = logits.astype(jnp.float32)
    if not training:
        x = jnp.clip(x, -5.0, 5.0)
    t = target.reshape(-1).astype(jnp.int32)
    logp = jax.nn.log_softmax(x, axis=-1)
    ce = -jnp.take_along_axis(logp, t[:, None], axis=-1)[:, 0]
    pt = jnp.exp(-ce)
    return jnp.mean(alpha * (1.0 - pt) ** gamma * ce)


if __name__ == "__main__":
    key = jax.random.PRNGKey(0)
    k1, k2, k3, k4 = jax.random.split(key, 4)

    # Case 1: small single-tile path, f32 logits.
    N1, C1 = 8, 16
    logits1 = jax.random.normal(k1, (N1, C1), dtype=jnp.float32)
    target1 = jax.random.randint(k2, (N1,), 0, C1, dtype=jnp.int32)
    out1 = jax.block_until_ready(
        per_class_bce_focal_loss(logits1, target1, gamma=0.2, alpha=0.6))
    ref1 = _reference(logits1, target1, gamma=0.2, alpha=0.6)
    assert jnp.allclose(out1, ref1, rtol=1e-5, atol=1e-5), (out1, ref1)

    # Case 2: multi-tile parallel grid with a ragged last tile (132 rows,
    # 64-row tiles) and bf16 logits passed without a host-side f32 cast.
    N2, C2 = 132, 10
    logits2 = jax.random.normal(k3, (N2, C2), dtype=jnp.float32).astype(jnp.bfloat16)
    target2 = jax.random.randint(k4, (N2,), 0, C2, dtype=jnp.int32)
    out2 = jax.block_until_ready(
        per_class_bce_focal_loss(logits2, target2, gamma=0.2, alpha=0.6,
                                 block_rows=64))
    ref2 = _reference(logits2, target2, gamma=0.2, alpha=0.6)
    assert jnp.allclose(out2, ref2, rtol=1e-4, atol=1e-4), (out2, ref2)

    # Case 3: eval-mode clamp path (training=False -> clamp logits to [-5, 5]).
    logits3 = 4.0 * logits1
    out3 = jax.block_until_ready(
        per_class_bce_focal_loss(logits3, target1, gamma=0.2, alpha=0.6,
                                 training=False))
    ref3 = _reference(logits3, target1, gamma=0.2, alpha=0.6, training=False)
    assert jnp.allclose(out3, ref3, rtol=1e-5, atol=1e-5), (out3, ref3)

    print("KERNEL_OK")
</pallas_src>

<mosaic_0001>
module attributes {stable_mosaic.version = 11 : i64} {
  func.func @_focal_ce_kernel(%arg0: i32, %arg1: memref<8x16xf32, #tpu.memory_space<vmem>>, %arg2: memref<8x1xi32, #tpu.memory_space<vmem>>, %arg3: memref<1x8x128xf32, #tpu.memory_space<vmem>>) attributes {dimension_semantics = [#tpu.dimension_semantics<parallel>], iteration_bounds = array<i64: 1>, scalar_prefetch = 0 : i64, scratch_operands = 0 : i64, tpu.core_type = #tpu.core_type<tc>, window_params = [{transform_indices = @transform_0, window_bounds = array<i64: 8, 16>}, {transform_indices = @transform_1, window_bounds = array<i64: 8, 1>}, {transform_indices = @transform_2, window_bounds = array<i64: 1, 8, 128>}]} {
    %c0 = arith.constant 0 : index
    %c0_0 = arith.constant 0 : index
    %0 = vector.load %arg1[%c0, %c0_0] : memref<8x16xf32, #tpu.memory_space<vmem>>, vector<8x16xf32>
    %c0_1 = arith.constant 0 : index
    %c0_2 = arith.constant 0 : index
    %1 = vector.load %arg2[%c0_1, %c0_2] : memref<8x1xi32, #tpu.memory_space<vmem>>, vector<8x1xi32>
    %2 = tpu.iota {dimensions = array<i32: 1>} : vector<8x16xi32>
    %3 = vector.broadcast %1 : vector<8x1xi32> to vector<8x16xi32>
    %4 = arith.cmpi eq, %2, %3 : vector<8x16xi32>
    %cst = arith.constant 0xFF800000 : f32
    %5 = vector.broadcast %cst : f32 to vector<8x16xf32>
    %6 = arith.select %4, %0, %5 : vector<8x16xi1>, vector<8x16xf32>
    %cst_3 = arith.constant dense<0xFF800000> : vector<8xf32>
    %7 = vector.multi_reduction <maximumf>, %6, %cst_3 [1] : vector<8x16xf32> to vector<8xf32>
    %8 = vector.shape_cast %7 : vector<8xf32> to vector<8x1xf32>
    %cst_4 = arith.constant dense<0xFF800000> : vector<8xf32>
    %9 = vector.multi_reduction <maximumf>, %0, %cst_4 [1] : vector<8x16xf32> to vector<8xf32>
    %10 = vector.shape_cast %9 : vector<8xf32> to vector<8x1xf32>
    %11 = vector.broadcast %10 : vector<8x1xf32> to vector<8x16xf32>
    %12 = arith.subf %0, %11 : vector<8x16xf32>
    %13 = math.exp %12 : vector<8x16xf32>
    %cst_5 = arith.constant dense<0.000000e+00> : vector<8xf32>
    %14 = vector.multi_reduction <add>, %13, %cst_5 [1] : vector<8x16xf32> to vector<8xf32>
    %15 = vector.shape_cast %14 : vector<8xf32> to vector<8x1xf32>
    %16 = math.log %15 : vector<8x1xf32>
    %17 = arith.addf %16, %10 : vector<8x1xf32>
    %18 = arith.subf %17, %8 : vector<8x1xf32>
    %cst_6 = arith.constant 0.000000e+00 : f32
    %19 = vector.broadcast %cst_6 : f32 to vector<8x1xf32>
    %20 = arith.maximumf %18, %19 : vector<8x1xf32>
    %cst_7 = arith.constant 0.000000e+00 : f32
    %21 = vector.broadcast %cst_7 : f32 to vector<8x1xf32>
    %22 = arith.subf %21, %20 : vector<8x1xf32>
    %23 = math.exp %22 : vector<8x1xf32>
    %cst_8 = arith.constant 1.000000e+00 : f32
    %24 = vector.broadcast %cst_8 : f32 to vector<8x1xf32>
    %25 = arith.subf %24, %23 : vector<8x1xf32>
    %cst_9 = arith.constant 0.000000e+00 : f32
    %26 = vector.broadcast %cst_9 : f32 to vector<8x1xf32>
    %27 = arith.maximumf %25, %26 : vector<8x1xf32>
    %cst_10 = arith.constant 2.000000e-01 : f32
    %28 = vector.broadcast %cst_10 : f32 to vector<8x1xf32>
    %29 = math.powf %27, %28 : vector<8x1xf32>
    %cst_11 = arith.constant 6.000000e-01 : f32
    %30 = vector.broadcast %cst_11 : f32 to vector<8x1xf32>
    %31 = arith.mulf %30, %29 : vector<8x1xf32>
    %32 = arith.mulf %31, %20 : vector<8x1xf32>
    %33 = tpu.iota {dimensions = array<i32: 0>} : vector<8x1xi32>
    %c8_i32 = arith.constant 8 : i32
    %34 = arith.muli %arg0, %c8_i32 : i32
    %35 = vector.broadcast %34 : i32 to vector<8x1xi32>
    %36 = arith.addi %33, %35 : vector<8x1xi32>
    %c8_i32_12 = arith.constant 8 : i32
    %37 = vector.broadcast %c8_i32_12 : i32 to vector<8x1xi32>
    %38 = arith.cmpi slt, %36, %37 : vector<8x1xi32>
    %cst_13 = arith.constant 0.000000e+00 : f32
    %39 = vector.broadcast %cst_13 : f32 to vector<8x1xf32>
    %40 = arith.select %38, %32, %39 : vector<8x1xi1>, vector<8x1xf32>
    %41 = vector.shape_cast %40 : vector<8x1xf32> to vector<1x8x1xf32>
    %cst_14 = arith.constant dense<0.000000e+00> : vector<1xf32>
    %42 = vector.multi_reduction <add>, %41, %cst_14 [1, 2] : vector<1x8x1xf32> to vector<1xf32>
    %43 = vector.shape_cast %42 : vector<1xf32> to vector<1x1x1xf32>
    %44 = vector.extract %43[0, 0, 0] : f32 from vector<1x1x1xf32>
    %45 = vector.broadcast %44 : f32 to vector<1x8x128xf32>
    %c0_15 = arith.constant 0 : index
    %c0_16 = arith.constant 0 : index
    %c0_17 = arith.constant 0 : index
    %46 = vector.load %arg3[%c0_15, %c0_16, %c0_17] : memref<1x8x128xf32, #tpu.memory_space<vmem>>, vector<1x8x128xf32>
    tpu.vector_store %arg3[%c0_15, %c0_16, %c0_17], %45 {strides = array<i32>} : memref<1x8x128xf32, #tpu.memory_space<vmem>>, vector<1x8x128xf32>,
    return
  }
  func.func @transform_0(%arg0: i32) -> (i32, i32) {
    %c0_i32 = arith.constant 0 : i32
    %c0_i32_0 = arith.constant 0 : i32
    return %arg0, %c0_i32 : i32, i32
  }
  func.func @transform_1(%arg0: i32) -> (i32, i32) {
    %c0_i32 = arith.constant 0 : i32
    %c0_i32_0 = arith.constant 0 : i32
    return %arg0, %c0_i32 : i32, i32
  }
  func.func @transform_2(%arg0: i32) -> (i32, i32, i32) {
    %c0_i32 = arith.constant 0 : i32
    %c0_i32_0 = arith.constant 0 : i32
    %c0_i32_1 = arith.constant 0 : i32
    return %arg0, %c0_i32, %c0_i32_0 : i32, i32, i32
  }
}

</mosaic_0001>

<bundles_post_ra>
// kernel: tpu_custom_call.1
= control target key start
LH: loop header
LB: loop body
LE: loop exit
PB: predicated region body
PF: predicated region fallthrough
CT: control target
= control target key end

     0   :  { %vm21_vm0 = vcmask 130048   ;;  %s228_s0 = inlined_call_operand.vmem [shape: f32[8,16], index: 0, kind: input, shape index: {}]   ;;  %s229_s1 = inlined_call_operand.vmem [shape: s32[8,1], index: 1, kind: input, shape index: {}]   ;;  %s230_s2 = inlined_call_operand.hbm [shape: f32[1,8,128], index: 2, kind: output, shape index: {}]  }
   0x1   :  { %v12_v0 = vld [vmem:[%s228_s0] sm:$0xff] }
   0x2   :  { %7 = vsyncpa [#allocation3], 0  ;;  %v25_v1 = vsel %vm21_vm0, %v12_v0, -inf  ;;  %v193_v2 = vmov 0   ;;  %v13_v3 = vld [vmem:[%s229_s1] sm:$0xff]  ;;  %v14_v9 = vlaneseq  ;;  %vm54_vm12 = vcmask 7168  }
   0x3   :  { %158 = vset.pattern.permute.xlu0 %v193_v2  ;;  %s194_s0 = smov [#allocation2]   ;;  %s74_s15 = sshll.u32 %s230_s2, 4  ;;  %s75_s15 = int_to_ptr.hbm [resolvable:$true] %s74_s15 }
   0x4   :  { %26 = vmax.xlane.f32.xlu0 %v25_v1  ;;  %v15_v10 = vand.u32 127, %v14_v9  ;;  %s72_s1 = sshll.u32 %s194_s0, 4  ;;  %s73_s1 = int_to_ptr.vmem [resolvable:$true] %s72_s1 }
  0x18   :  { %17 = vperm.xlu0 %158, %v13_v3  }
  0x77   :  { %v27_v4 = vpop.xlane.xlu0 %26 }
  0x78   :  { %v28_v5 = vsub.f32 %v12_v0, %v27_v4 }
  0x7a   :  { %v29_v6 = vmul.f32 1.442695, %v28_v5 }
  0x7c   :  { %159 = vpow2.f32 %v29_v6 }
  0x82   :  { %v160_v7 = vpop.eup %159 }
  0x83   :  { %v31_v8 = vsel %vm21_vm0, %v160_v7, 0.0 }
  0x84   :  { %32 = vadd.xlane.f32.xlu1 %v31_v8 }
  0x8a   :  { %v18_v11 = vpop.permute.xlu0 %17 }
  0x8b   :  { %vm19_vm1 = vcmp.eq.s32.totalorder %v15_v10, %v18_v11 }
  0x8c   :  { %v20_v12 = vsel %vm19_vm1, %v12_v0, -inf }
  0x8d   :  { %v22_v13 = vsel %vm21_vm0, %v20_v12, -inf }
  0x8e   :  { %23 = vmax.xlane.f32.xlu1 %v22_v13 }
  0xf7   :  { %v33_v14 = vpop.xlane.xlu1 %32 }
  0xf8   :  { %161 = vlog2.f32 %v33_v14 }
  0xfe   :  { %v162_v15 = vpop.eup %161 }
  0xff   :  { %v35_v16 = vmul.f32 0.6931472, %v162_v15 }
 0x101   :  { %v36_v17 = vadd.f32 %v35_v16, %v27_v4  ;;  %v24_v18 = vpop.xlane.xlu1 %23 }
 0x103   :  { %v37_v19 = vsub.f32 %v36_v17, %v24_v18 }
 0x105   :  { %v219_v20 = vmax.f32 %v37_v19, 0.0 }
 0x107   :  { %v39_v21 = vsub.f32 0.0, %v219_v20 }
 0x109   :  { %v40_v22 = vmul.f32 1.442695, %v39_v21 }
 0x10b   :  { %163 = vpow2.f32 %v40_v22 }
 0x111   :  { %v164_v23 = vpop.eup %163 }
 0x112   :  { %v42_v24 = vsub.f32 1.0, %v164_v23 }
 0x114   :  { %v43_v25 = vmax.f32 %v42_v24, 0.0 }
 0x116   :  { %v87_v26 = vand.u32 2147483647, %v43_v25  ;;  %vm134_vm7 = vcmp.lt.f32.partialorder %v43_v25, 0  ;;  %vm135_vm8 = vcmp.eq.f32.partialorder %v43_v25, 0  ;;  %vm147_vm10 = vcmp.ne.f32.partialorder %v43_v25, %v43_v25 }
 0x117   :  { %vm136_vm11 = vcmp.eq.f32.partialorder %v43_v25, 1065353216 }
 0x118   :  { %v93_v27 = vand.u32 8388607, %v87_v26  ;;  %v89_v35 = vand.u32 2139095040, %v87_v26  ;;  %vm127_vm3 = vweird.f32 %v87_v26  ;;  %vm126_vm4 = vcmp.lt.f32.partialorder %v87_v26, 0.0 }
 0x119   :  { %vm125_vm5 = vcmp.eq.f32.partialorder %v87_v26, 0.0  ;;  %vm124_vm6 = vcmp.eq.f32.partialorder %v87_v26, 1.0  ;;  %vm139_vm9 = vcmp.eq.f32.partialorder %v87_v26, 2139095040 }
 0x11a   :  { %v94_v28 = vor.u32 8388608, %v93_v27  ;;  %v90_v40 = vshrl.u32 %v89_v35, 23 }
 0x11c   :  { %v96_v29 = vand.u32 8388607, %v94_v28  ;;  %v152_v45 = vadd.s32 4294967169, %v90_v40 }
 0x11e   :  { %v97_v30 = vor.u32 1065353216, %v96_v29  ;;  %v101_v50 = vadd.s32 1, %v152_v45 }
 0x120   :  { %vm98_vm2 = vcmp.ge.f32.partialorder %v97_v30, 1.4142135  ;;  %v99_v31 = vmul.f32 0.5, %v97_v30 }
 0x121   :  { %v102_v54 = vsel %vm98_vm2, %v101_v50, %v152_v45 }
 0x122   :  { %v100_v32 = vsel %vm98_vm2, %v99_v31, %v97_v30  ;;  %v122_v57 = vcvt.s32.f32 %v102_v54 }
 0x123   :  { %v153_v33 = vadd.f32 -1.0, %v100_v32 }
 0x125   :  { %v104_v34 = vmul.f32 %v153_v33, %v153_v33 }
 0x127   :  { %v105_v36 = vmul.f32 0.12621109, %v104_v34  ;;  %v107_v37 = vmul.f32 -0.20706727, %v104_v34 }
 0x129   :  { %v106_v38 = vadd.f32 0.21545328, %v105_v36  ;;  %v108_v39 = vadd.f32 -0.23896284, %v107_v37 }
 0x12b   :  { %v109_v41 = vmul.f32 %v106_v38, %v104_v34  ;;  %v111_v42 = vmul.f32 %v108_v39, %v104_v34 }
 0x12d   :  { %v110_v43 = vadd.f32 0.28795174, %v109_v41  ;;  %v112_v44 = vadd.f32 -0.3607037, %v111_v42 }
 0x12f   :  { %v113_v46 = vmul.f32 %v110_v43, %v104_v34  ;;  %v115_v47 = vmul.f32 %v112_v44, %v104_v34 }
 0x131   :  { %v114_v48 = vadd.f32 0.48090908, %v113_v46  ;;  %v116_v49 = vadd.f32 -0.72134733, %v115_v47 }
 0x133   :  { %v117_v51 = vmul.f32 %v114_v48, %v104_v34  ;;  %v119_v53 = vmul.f32 %v153_v33, %v116_v49 }
 0x135   :  { %v118_v52 = vadd.f32 1.442695, %v117_v51 }
 0x137   :  { %v120_v55 = vadd.f32 %v119_v53, %v118_v52 }
 0x139   :  { %v121_v56 = vmul.f32 %v153_v33, %v120_v55 }
 0x13b   :  { %v123_v58 = vadd.f32 %v122_v57, %v121_v56 }
 0x13d   :  { %v128_v59 = vsel %vm127_vm3, %v87_v26, %v123_v58 }
 0x13e   :  { %v129_v60 = vsel %vm126_vm4, nan, %v128_v59 }
 0x13f   :  { %v130_v61 = vsel %vm125_vm5, -inf, %v129_v60 }
 0x140   :  { %v131_v62 = vsel %vm124_vm6, 0.0, %v130_v61 }
 0x141   :  { %v132_v63 = vmul.f32 0.2, %v131_v62 }
 0x143   :  { %165 = vpow2.f32 %v132_v63 }
 0x149   :  { %v166_v0 = vpop.eup %165 }
 0x14a   :  { %v140_v1 = vsel %vm134_vm7, 2143289344, %v166_v0 }
 0x14b   :  { %v141_v2 = vsel %vm135_vm8, 0, %v140_v1 }
 0x14c   :  { %v146_v3 = vsel %vm139_vm9, 2139095040, %v141_v2 }
 0x14d   :  { %v150_v4 = vsel %vm147_vm10, 2143289344, %v146_v3 }
 0x14e   :  { %v151_v5 = vsel %vm136_vm11, 1065353216, %v150_v4 }
 0x14f   :  { %v45_v6 = vmul.f32 0.6, %v151_v5 }
 0x151   :  { %v46_v7 = vmul.f32 %v45_v6, %v219_v20 }
 0x153   :  { %v55_v8 = vsel %vm54_vm12, %v46_v7, 0.0 }
 0x154   :  { %56 = vadd.xlane.f32.xlu2 %v55_v8 }
 0x1c7   :  { %v57_v9 = vpop.xlane.xlu2 %56 }
 0x1c8   :  { %v58_v10 = vrot.slane %v57_v9, 4 }
 0x1ca   :  { %v59_v11 = vadd.f32 %v58_v10, %v57_v9 }
 0x1cc   :  { %v60_v12 = vrot.slane %v59_v11, 2 }
 0x1ce   :  { %v61_v13 = vadd.f32 %v60_v12, %v59_v11 }
 0x1d0   :  { %v62_v14 = vrot.slane %v61_v13, 1 }
 0x1d2   :  { %v63_v15 = vadd.f32 %v62_v14, %v61_v13 }
 0x1d4   :  { %154 = vpush %v63_v15 }
 0x205   :  { %s155_s16 = spop %154 }
 0x206   :  { %v65_v16 = vstv %s155_s16 }
 0x207   :  { %66 = vst [vmem:[#allocation2] sm:$0xff] %v65_v16 }
 0x208   :  { %77 = dma.vmem_to_hbm [thread:$0]  %s73_s1, 128, %s75_s15, [#allocation3]  }
 0x209   :  { %191 = dma.done.wait [#allocation3], 128  }
 0x20a   :  { %192 = vsyncadd [#allocation3], 4294967168 }
 0x20b   :  { %82 = vsyncpa [#allocation3], 1 }

</bundles_post_ra>
